<compile_context>
chip_gen: v5e
topology: v5e:2x2
jax: 0.10.0
libtpu: 0.0.40
codegen_flags: <defaults>
</compile_context>

<pallas_src>
import functools
import math

import jax
import jax.numpy as jnp
from jax.experimental import pallas as pl
from jax.experimental.pallas import tpu as pltpu

PAD = 128            # padded lane width for hidden / action lanes
ONES_ROW = PAD - 1   # spare slab row holding biases; also the constant-1 lane
TB_MAX = 256         # max batch rows per grid step (>=256 fills MXU on v6e/v7x)


def dqn_kernel(x_ref, w_ref, o_ref, *, k_in):
    """Fused 4-layer MLP forward for one (TB, k_in) batch tile.

    x_ref: (TB, k_in)    f32   unpadded observations (cast to bf16 here)
    w_ref: (4, PAD, PAD) bf16  weight slab; row ONES_ROW of each layer holds the
                               bias, w[0..2][ONES_ROW, ONES_ROW] = 1 keeps a
                               constant-1 lane alive through the ReLUs.
    o_ref: (TB, PAD)     bf16  zero-padded Q-values (wrapper slices n_actions)
    """
    h = x_ref[...].astype(jnp.bfloat16)

    # Layer 1: contract only over the real K=k_in features; the broadcast bias
    # row also sets lane ONES_ROW to 1.0, seeding the ones-lane used below.
    b0 = w_ref[0, ONES_ROW:ONES_ROW + 1, :].astype(jnp.float32)      # (1, PAD)
    h = jnp.dot(h, w_ref[0, :k_in, :], preferred_element_type=jnp.float32) + b0
    h = jnp.maximum(h, 0.0).astype(jnp.bfloat16)

    # Layers 2-3: bias arrives via the ones-lane * slab row ONES_ROW, so the
    # matmul alone is the whole layer; ReLU keeps the ones-lane at 1.
    for i in (1, 2):
        h = jnp.dot(h, w_ref[i], preferred_element_type=jnp.float32)
        h = jnp.maximum(h, 0.0).astype(jnp.bfloat16)

    # Layer 4 (no ReLU), bias folded the same way. Lane-dense bf16 store.
    o_ref[...] = jnp.dot(h, w_ref[3],
                         preferred_element_type=jnp.float32).astype(o_ref.dtype)


def _pick_tb(batch):
    """Large tiles amortize per-step overhead; keep >=2 steps for v7x's 2 TCs."""
    tb = min(TB_MAX, max(8, -(-batch // 2)))
    return -(-tb // 8) * 8  # sublane multiple


def dqn_forward(x, w_slab, n_actions):
    """x: (B, n_observations) f32. w_slab: (4, PAD, PAD) bf16. Returns (B, n_actions) bf16."""
    B, n_obs = x.shape
    k_in = -(-n_obs // 8) * 8            # sublane-align the layer-1 contraction
    tb = _pick_tb(B)
    Bp = pl.cdiv(B, tb) * tb

    xp = x
    if Bp != B or k_in != n_obs:         # no-op (no extra HBM pass) when aligned
        xp = jnp.pad(x, ((0, Bp - B), (0, k_in - n_obs)))

    flops = 2 * Bp * (k_in * 64 + 64 * 64 + 64 * 64 + 64 * n_actions)
    bytes_accessed = Bp * k_in * 4 + 4 * PAD * PAD * 2 + Bp * PAD * 2

    out = pl.pallas_call(
        functools.partial(dqn_kernel, k_in=k_in),
        out_shape=jax.ShapeDtypeStruct((Bp, PAD), jnp.bfloat16),
        grid=(Bp // tb,),
        in_specs=[
            pl.BlockSpec((tb, k_in), lambda i: (i, 0)),        # batch tile of x
            # Constant index_map -> the 128 KiB slab is DMA'd once and reused
            # across grid steps (no re-fetch), so no extra buffering needed.
            pl.BlockSpec((4, PAD, PAD), lambda i: (0, 0, 0)),
        ],
        out_specs=pl.BlockSpec((tb, PAD), lambda i: (i, 0)),
        compiler_params=pltpu.CompilerParams(
            dimension_semantics=("parallel",)),
        cost_estimate=pl.CostEstimate(
            flops=flops, transcendentals=0, bytes_accessed=bytes_accessed),
    )(xp, w_slab)

    # Padded lanes/rows are exactly zero; slice them away.
    return out[:B, :n_actions]


def init_params(key, n_observations, n_actions):
    """PyTorch-style uniform(+-1/sqrt(fan_in)) init, packed into one bf16 slab.

    Weights stored (in, out) so the kernel computes x @ W == PyTorch x @ W_pt.T.
    Bias of each layer is written to row ONES_ROW and applied through a
    constant-1 activation lane (lane ONES_ROW), so no separate bias tensor.
    """
    # TODO(synk): the real catanatron env has n_observations/n_actions > 128;
    # that would need K-tiling of layer 1 and N-tiling of layer 4.
    assert n_observations <= 120 and n_actions <= PAD

    sizes = [(n_observations, 64), (64, 64), (64, 64), (64, n_actions)]
    w_slab = jnp.zeros((4, PAD, PAD), jnp.float32)
    raw = []
    for li, (fan_in, fan_out) in enumerate(sizes):
        key, kw, kb = jax.random.split(key, 3)
        bound = 1.0 / math.sqrt(fan_in)
        w = jax.random.uniform(kw, (fan_in, fan_out), jnp.float32, -bound, bound)
        b = jax.random.uniform(kb, (1, fan_out), jnp.float32, -bound, bound)
        raw.append((w, b))
        w_slab = w_slab.at[li, :fan_in, :fan_out].set(w)
        w_slab = w_slab.at[li, ONES_ROW, :fan_out].set(b[0])       # folded bias
        if li < 3:
            w_slab = w_slab.at[li, ONES_ROW, ONES_ROW].set(1.0)    # keep ones-lane
    return w_slab.astype(jnp.bfloat16), raw


def dqn_reference(x, raw_params):
    """Pure-JAX reference matching the kernel's bf16 operand rounding."""
    h = x.astype(jnp.bfloat16).astype(jnp.float32)
    for li, (w, b) in enumerate(raw_params):
        wq = w.astype(jnp.bfloat16).astype(jnp.float32)
        bq = b.astype(jnp.bfloat16).astype(jnp.float32)
        h = h @ wq + bq
        if li < 3:
            h = jnp.maximum(h, 0.0).astype(jnp.bfloat16).astype(jnp.float32)
    return h


if __name__ == "__main__":
    key = jax.random.PRNGKey(0)
    n_observations = 32   # len(state) for the synthetic env
    n_actions = 16        # env.action_space.n (synthetic)
    batch = 512           # 2 grid steps of 256 rows: exercises pipeline + both TCs

    key, kx = jax.random.split(key)
    x = jax.random.normal(kx, (batch, n_observations), jnp.float32)
    w_slab, raw = init_params(key, n_observations, n_actions)

    out = dqn_forward(x, w_slab, n_actions)
    out = jax.block_until_ready(out)

    ref = dqn_reference(x, raw)
    assert out.shape == (batch, n_actions)
    # bf16 operands + bf16 output -> loose tolerance (fine for argmax action selection).
    err = float(jnp.max(jnp.abs(out.astype(jnp.float32) - ref)))
    assert jnp.allclose(out.astype(jnp.float32), ref, atol=2e-2, rtol=2e-2), err

    print("KERNEL_OK")
</pallas_src>

<mosaic_0001>
module attributes {stable_mosaic.version = 11 : i64} {
  func.func @dqn_kernel(%arg0: i32, %arg1: memref<256x32xf32, #tpu.memory_space<vmem>>, %arg2: memref<4x128x128xbf16, #tpu.memory_space<vmem>>, %arg3: memref<256x128xbf16, #tpu.memory_space<vmem>>) attributes {dimension_semantics = [#tpu.dimension_semantics<parallel>], iteration_bounds = array<i64: 2>, scalar_prefetch = 0 : i64, scratch_operands = 0 : i64, tpu.core_type = #tpu.core_type<tc>, window_params = [{transform_indices = @transform_0, window_bounds = array<i64: 256, 32>}, {pipeline_mode = #tpu.pipeline_mode<synchronous>, transform_indices = @transform_1, window_bounds = array<i64: 4, 128, 128>}, {transform_indices = @transform_2, window_bounds = array<i64: 256, 128>}]} {
    %c0 = arith.constant 0 : index
    %c0_0 = arith.constant 0 : index
    %0 = vector.load %arg1[%c0, %c0_0] : memref<256x32xf32, #tpu.memory_space<vmem>>, vector<256x32xf32>
    %1 = arith.truncf %0 : vector<256x32xf32> to vector<256x32xbf16>
    %c0_1 = arith.constant 0 : index
    %c127 = arith.constant 127 : index
    %c0_2 = arith.constant 0 : index
    %2 = vector.load %arg2[%c0_1, %c127, %c0_2] : memref<4x128x128xbf16, #tpu.memory_space<vmem>>, vector<1x1x128xbf16>
    %3 = vector.shape_cast %2 : vector<1x1x128xbf16> to vector<1x128xbf16>
    %4 = arith.extf %3 : vector<1x128xbf16> to vector<1x128xf32>
    %c0_3 = arith.constant 0 : index
    %c0_4 = arith.constant 0 : index
    %c0_5 = arith.constant 0 : index
    %5 = vector.load %arg2[%c0_3, %c0_4, %c0_5] : memref<4x128x128xbf16, #tpu.memory_space<vmem>>, vector<1x32x128xbf16>
    %6 = vector.shape_cast %5 : vector<1x32x128xbf16> to vector<32x128xbf16>
    %cst = arith.constant dense<0.000000e+00> : vector<256x128xf32>
    %7 = tpu.matmul %1, %6, %cst {dimension_numbers = #tpu.dot_dimension_numbers<[1], [0], [0], [1], [0, 0, 1, 1], [], []>} : vector<256x32xbf16>, vector<32x128xbf16>, vector<256x128xf32> -> vector<256x128xf32>
    %8 = vector.broadcast %4 : vector<1x128xf32> to vector<256x128xf32>
    %9 = arith.addf %7, %8 : vector<256x128xf32>
    %cst_6 = arith.constant 0.000000e+00 : f32
    %10 = vector.broadcast %cst_6 : f32 to vector<256x128xf32>
    %11 = arith.maximumf %9, %10 : vector<256x128xf32>
    %12 = arith.truncf %11 : vector<256x128xf32> to vector<256x128xbf16>
    %c1 = arith.constant 1 : index
    %c0_7 = arith.constant 0 : index
    %c0_8 = arith.constant 0 : index
    %13 = vector.load %arg2[%c1, %c0_7, %c0_8] : memref<4x128x128xbf16, #tpu.memory_space<vmem>>, vector<1x128x128xbf16>
    %14 = vector.shape_cast %13 : vector<1x128x128xbf16> to vector<128x128xbf16>
    %cst_9 = arith.constant dense<0.000000e+00> : vector<256x128xf32>
    %15 = tpu.matmul %12, %14, %cst_9 {dimension_numbers = #tpu.dot_dimension_numbers<[1], [0], [0], [1], [0, 0, 1, 1], [], []>} : vector<256x128xbf16>, vector<128x128xbf16>, vector<256x128xf32> -> vector<256x128xf32>
    %cst_10 = arith.constant 0.000000e+00 : f32
    %16 = vector.broadcast %cst_10 : f32 to vector<256x128xf32>
    %17 = arith.maximumf %15, %16 : vector<256x128xf32>
    %18 = arith.truncf %17 : vector<256x128xf32> to vector<256x128xbf16>
    %c2 = arith.constant 2 : index
    %c0_11 = arith.constant 0 : index
    %c0_12 = arith.constant 0 : index
    %19 = vector.load %arg2[%c2, %c0_11, %c0_12] : memref<4x128x128xbf16, #tpu.memory_space<vmem>>, vector<1x128x128xbf16>
    %20 = vector.shape_cast %19 : vector<1x128x128xbf16> to vector<128x128xbf16>
    %cst_13 = arith.constant dense<0.000000e+00> : vector<256x128xf32>
    %21 = tpu.matmul %18, %20, %cst_13 {dimension_numbers = #tpu.dot_dimension_numbers<[1], [0], [0], [1], [0, 0, 1, 1], [], []>} : vector<256x128xbf16>, vector<128x128xbf16>, vector<256x128xf32> -> vector<256x128xf32>
    %cst_14 = arith.constant 0.000000e+00 : f32
    %22 = vector.broadcast %cst_14 : f32 to vector<256x128xf32>
    %23 = arith.maximumf %21, %22 : vector<256x128xf32>
    %24 = arith.truncf %23 : vector<256x128xf32> to vector<256x128xbf16>
    %c3 = arith.constant 3 : index
    %c0_15 = arith.constant 0 : index
    %c0_16 = arith.constant 0 : index
    %25 = vector.load %arg2[%c3, %c0_15, %c0_16] : memref<4x128x128xbf16, #tpu.memory_space<vmem>>, vector<1x128x128xbf16>
    %26 = vector.shape_cast %25 : vector<1x128x128xbf16> to vector<128x128xbf16>
    %cst_17 = arith.constant dense<0.000000e+00> : vector<256x128xf32>
    %27 = tpu.matmul %24, %26, %cst_17 {dimension_numbers = #tpu.dot_dimension_numbers<[1], [0], [0], [1], [0, 0, 1, 1], [], []>} : vector<256x128xbf16>, vector<128x128xbf16>, vector<256x128xf32> -> vector<256x128xf32>
    %28 = arith.truncf %27 : vector<256x128xf32> to vector<256x128xbf16>
    %c0_18 = arith.constant 0 : index
    %c0_19 = arith.constant 0 : index
    %29 = vector.load %arg3[%c0_18, %c0_19] : memref<256x128xbf16, #tpu.memory_space<vmem>>, vector<256x128xbf16>
    tpu.vector_store %arg3[%c0_18, %c0_19], %28 {strides = array<i32>} : memref<256x128xbf16, #tpu.memory_space<vmem>>, vector<256x128xbf16>,
    return
  }
  func.func @transform_0(%arg0: i32) -> (i32, i32) {
    %c0_i32 = arith.constant 0 : i32
    %c0_i32_0 = arith.constant 0 : i32
    return %arg0, %c0_i32 : i32, i32
  }
  func.func @transform_1(%arg0: i32) -> (i32, i32, i32) {
    %c0_i32 = arith.constant 0 : i32
    %c0_i32_0 = arith.constant 0 : i32
    %c0_i32_1 = arith.constant 0 : i32
    %c0_i32_2 = arith.constant 0 : i32
    return %c0_i32, %c0_i32_0, %c0_i32_1 : i32, i32, i32
  }
  func.func @transform_2(%arg0: i32) -> (i32, i32) {
    %c0_i32 = arith.constant 0 : i32
    %c0_i32_0 = arith.constant 0 : i32
    return %arg0, %c0_i32 : i32, i32
  }
}

</mosaic_0001>

<bundles_post_ra>
// kernel: tpu_custom_call.1
= control target key start
LH: loop header
LB: loop body
LE: loop exit
PB: predicated region body
PF: predicated region fallthrough
CT: control target
= control target key end

     0   :  { %7 = vsyncpa [#allocation3], 0  ;;  %s1795_s0 = inlined_call_operand.vmem [shape: f32[512,32], index: 0, kind: input, shape index: {}]   ;;  %s1796_s1 = inlined_call_operand.vmem [shape: bf16[4,128,128], index: 1, kind: input, shape index: {}]   ;;  %s1797_s2 = inlined_call_operand.hbm [shape: bf16[512,128], index: 2, kind: output, shape index: {}]  }
   0x1   :  { %9 = vsyncpa [#allocation3 + $0x1], 0  ;;  %s1523_s9 = smov 0   ;;  %s1525_s10 = smov 0  }
   0x2   :  { %s1527_s11 = smov 0   ;;  %s1529_s12 = smov 0  }
   0x3 LB: > { %s1544_s13 = sadd.s32 4294967295, %s1504_s12   ;;  %s1099_s14 = sadd.s32 4294967294, %s1504_s12   ;;  %s1504_s12 = sphi %s1529_s12, %s1803_s12   ;;  %s1500_s11 = sphi %s1527_s11, %s1802_s11   ;;  %s1496_s10 = sphi %s1525_s10, %s1801_s10   ;;  %s1492_s9 = sphi %s1523_s9, %s1800_s9  }
   0x4   : > { %s1548_s15 = sadd.s32 1, %s1504_s12   ;;  %s69_s16 = sadd.s32 1, %s1500_s11 }
   0x5   : > { %s66_s17 = ssub.s32 %s1504_s12, %s1548_s15  ;;  %p79_p0 = scmp.ne.s32.totalorder %s1500_s11, %s1496_s10 }
   0x6   : > { %p67_p1 = scmp.eq.s32.totalorder %s66_s17, 0  ;;  %p80_p2 = scmp.eq.s32.totalorder %s1544_s13, 1 }
   0x7   : > { %p85_p3 = scmp.ne.s32.totalorder %s1496_s10, %s1492_s9  ;;  %p86_p4 = scmp.eq.s32.totalorder %s1099_s14, 1 }
   0x8   : > { %s1559_s18 = scalar_select %p67_p1, %s1500_s11, %s69_s16  }
   0x9   : > { %p1561_p5 = por %p80_p2, %p79_p0  ;;  %p1565_p6 = por %p86_p4, %p85_p3 }
   0xa   : > { %p1102_p7 = scmp.ge.s32.totalorder %s1504_s12, 1  ;;  %p116_p8 = scmp.lt.s32.totalorder %s1504_s12, 3 }
   0xc   : > { %p117_p9 = pnand %p1102_p7, %p116_p8 }
   0xd   : > { %s1104_s23 = sshll.u32 (!%p117_p9), %s1544_s13, 5  ;;  %s135_s24 = sand.u32 (!%p117_p9), 1, %s1496_s10  }
   0xe   : > { %120 = sbr.rel (%p117_p9) target bundleno = 835 (0x343), region = 28  ;;  %p139_p10 = scmp.lt.s32.totalorder (!%p117_p9), %s1104_s23, 63 }
   0xf   : > { %s1103_s25 = sshll.u32 (!%p117_p9), %s135_s24, 7  ;;  %s1022_s5 = scalar_lea.sflag (!%p117_p9), [#allocation3], %s135_s24 }
  0x10   : > { %s1462_s14 = scalar_lea.hbm (!%p117_p9), %s1797_s2, 256 }
  0x13   : > { %v1280_v0 = vld [vmem:[%s1796_s1 + $0x8] sm:$0xff]  ;;  %v1279_v1 = vld [vmem:[%s1796_s1] sm:$0xff]  ;;  %s1805_s23 = smov (!%p139_p10, %s1104_s23), 63  ;;  %vm213_vm0 = vcmask 261120   ;;  %v1288_v17 = vld [vmem:[%s1796_s1 + $0x78] sm:$0xff] }
  0x14   : > { %268 = vmatpush.bf16.msra.mxu0 %v1280_v0  ;;  %s1105_s26 = sshll.u32 %s1805_s23, 3  ;;  %464 = vmatpush.bf16.msra.mxu1 %v1288_v17  ;;  %v1287_v21 = vld [vmem:[%s1796_s1 + $0x70] sm:$0xff]  ;;  %v1286_v22 = vld [vmem:[%s1796_s1 + $0x68] sm:$0xff]  ;;  %v1285_v23 = vld [vmem:[%s1796_s1 + $0x60] sm:$0xff] }
  0x15   : > { %s1581_s29 = scalar_lea.vmem %s1795_s0, %s1105_s26  ;;  %v1284_v26 = vld [vmem:[%s1796_s1 + $0x58] sm:$0xff]  ;;  %v1283_v28 = vld [vmem:[%s1796_s1 + $0x50] sm:$0xff]  ;;  %v1282_v29 = vld [vmem:[%s1796_s1 + $0x48] sm:$0xff]  ;;  %s1743_s26 = scalar_lea.vmem [#allocation2], %s1103_s25 }
  0x16   : > { %v146_v2 = vld [vmem:[%s1581_s29] sm:$0xff]  ;;  %v147_v3 = vld [vmem:[%s1581_s29 + $0x8] sm:$0xff]  ;;  %v148_v5 = vld [vmem:[%s1581_s29 + $0x10] sm:$0xff]  ;;  %s1034_s3 = sshll.u32 %s1743_s26, 4  ;;  %s1035_s3 = int_to_ptr.vmem [resolvable:$true] %s1034_s3 }
  0x17   : > { %v178_v4 = vpack.c.bf16 %v147_v3, %v146_v2  ;;  %v149_v6 = vld [vmem:[%s1581_s29 + $0x18] sm:$0xff]  ;;  %v150_v8 = vld [vmem:[%s1581_s29 + $0x20] sm:$0xff]  ;;  %v151_v9 = vld [vmem:[%s1581_s29 + $0x28] sm:$0xff] }
  0x18   : > { %269 = vmatpush.bf16.msra.mxu0 %v1279_v1  ;;  %v179_v7 = vpack.c.bf16 %v149_v6, %v148_v5  ;;  %v180_v10 = vpack.c.bf16 %v151_v9, %v150_v8  ;;  %v152_v11 = vld [vmem:[%s1581_s29 + $0x30] sm:$0xff]  ;;  %v153_v12 = vld [vmem:[%s1581_s29 + $0x38] sm:$0xff]  ;;  %v154_v14 = vld [vmem:[%s1581_s29 + $0x40] sm:$0xff]  ;;  %465 = vmatpush.bf16.msra.mxu1 %v1287_v21 }
  0x19   : > { %v181_v13 = vpack.c.bf16 %v153_v12, %v152_v11  ;;  %v155_v15 = vld [vmem:[%s1581_s29 + $0x48] sm:$0xff]  ;;  %v156_v18 = vld [vmem:[%s1581_s29 + $0x50] sm:$0xff]  ;;  %v157_v19 = vld [vmem:[%s1581_s29 + $0x58] sm:$0xff] }
  0x1a   : > { %v182_v16 = vpack.c.bf16 %v155_v15, %v154_v14  ;;  %v183_v20 = vpack.c.bf16 %v157_v19, %v156_v18  ;;  %v158_v24 = vld [vmem:[%s1581_s29 + $0x60] sm:$0xff]  ;;  %v159_v25 = vld [vmem:[%s1581_s29 + $0x68] sm:$0xff]  ;;  %v160_v31 = vld [vmem:[%s1581_s29 + $0x70] sm:$0xff] }
  0x1b   : > { %1114 = vmatmul.msk.bf16.vlgmr.msra.gmra.mxu0 %vm213_vm0, %v178_v4  ;;  %v184_v27 = vpack.c.bf16 %v159_v25, %v158_v24  ;;  %v1281_v30 = vld [vmem:[%s1796_s1 + $0x40] sm:$0xff]  ;;  %v161_v32 = vld [vmem:[%s1581_s29 + $0x78] sm:$0xff]  ;;  %v163_v36 = vld [vmem:[%s1581_s29 + $0x88] sm:$0xff] }
  0x1c   : > { %466 = vmatpush.bf16.msra.mxu1 %v1286_v22  ;;  %v185_v33 = vpack.c.bf16 %v161_v32, %v160_v31  ;;  %v194_v34 = vld [vmem:[%s1796_s1 + $0x3c] sm:$0x8]  ;;  %v162_v35 = vld [vmem:[%s1581_s29 + $0x80] sm:$0xff]  ;;  %v164_v46 = vld [vmem:[%s1581_s29 + $0x90] sm:$0xff] }
  0x1d   : > { %v195_v37 = vunpack.c.l.bf16 %v194_v34  ;;  %v186_v38 = vpack.c.bf16 %v163_v36, %v162_v35  ;;  %v165_v47 = vld [vmem:[%s1581_s29 + $0x98] sm:$0xff]  ;;  %v166_v56 = vld [vmem:[%s1581_s29 + $0xa0] sm:$0xff]  ;;  %v167_v57 = vld [vmem:[%s1581_s29 + $0xa8] sm:$0xff] }
  0x1e   : > { %v187_v49 = vpack.c.bf16 %v165_v47, %v164_v46  ;;  %v188_v59 = vpack.c.bf16 %v167_v57, %v166_v56  ;;  %v168_v2 = vld [vmem:[%s1581_s29 + $0xb0] sm:$0xff]  ;;  %v169_v3 = vld [vmem:[%s1581_s29 + $0xb8] sm:$0xff]  ;;  %v170_v12 = vld [vmem:[%s1581_s29 + $0xc0] sm:$0xff] }
  0x1f   : > { %v1636_v40 = vperm.slane %v195_v37, 7  ;;  %v189_v5 = vpack.c.bf16 %v169_v3, %v168_v2  ;;  %v172_v22 = vld [vmem:[%s1581_s29 + $0xd0] sm:$0xff]  ;;  %v174_v34 = vld [vmem:[%s1581_s29 + $0xe0] sm:$0xff]  ;;  %v175_v35 = vld [vmem:[%s1581_s29 + $0xe8] sm:$0xff] }
  0x20   : > { %467 = vmatpush.bf16.msra.mxu1 %v1285_v23  ;;  %v173_v23 = vld [vmem:[%s1581_s29 + $0xd8] sm:$0xff]  ;;  %v192_v37 = vpack.c.bf16 %v175_v35, %v174_v34 }
  0x21   : > { %v191_v25 = vpack.c.bf16 %v173_v23, %v172_v22 }
  0x24   : > { %468 = vmatpush.bf16.msra.mxu1 %v1284_v26 }
  0x28   : > { %469 = vmatpush.bf16.msra.mxu1 %v1283_v28 }
  0x2b   : > { %1115 = vmatmul.msk.bf16.gmra.mxu0 %vm213_vm0, %v179_v7 }
  0x2c   : > { %470 = vmatpush.bf16.msra.mxu1 %v1282_v29  ;;  %v1296_v29 = vld [vmem:[%s1796_s1 + $0xb8] sm:$0xff] }
  0x2d   : > { %666 = vmatpush.bf16.msra.mxu2 %v1296_v29 }
  0x30   : > { %471 = vmatpush.bf16.msra.mxu1 %v1281_v30 }
  0x3b   : > { %1116 = vmatmul.msk.bf16.gmra.mxu0 %vm213_vm0, %v180_v10 }
  0x4b   : > { %1117 = vmatmul.msk.bf16.gmra.mxu0 %vm213_vm0, %v181_v13  ;;  %v171_v13 = vld [vmem:[%s1581_s29 + $0xc8] sm:$0xff] }
  0x4c   : > { %v190_v15 = vpack.c.bf16 %v171_v13, %v170_v12 }
  0x5b   : > { %1118 = vmatmul.msk.bf16.gmra.mxu0 %vm213_vm0, %v182_v16 }
  0x6b   : > { %1119 = vmatmul.msk.bf16.gmra.mxu0 %vm213_vm0, %v183_v20 }
  0x7b   : > { %1120 = vmatmul.msk.bf16.gmra.mxu0 %vm213_vm0, %v184_v27 }
  0x8b   : > { %1121 = vmatmul.msk.bf16.gmra.mxu0 %vm213_vm0, %v185_v33  ;;  %v1295_v33 = vld [vmem:[%s1796_s1 + $0xb0] sm:$0xff] }
  0x8c   : > { %667 = vmatpush.bf16.msra.mxu2 %v1295_v33 }
  0x98   : > { %v271_v39 = vpop.f32.mrf.mxu0 }
  0x99   : > { %v272_v41 = vadd.f32 %v271_v39, %v1636_v40  ;;  %v1294_v39 = vld [vmem:[%s1796_s1 + $0xa8] sm:$0xff] }
  0x9a   : > { %668 = vmatpush.bf16.msra.mxu2 %v1294_v39 }
  0x9b   : > { %1122 = vmatmul.msk.bf16.gmra.mxu0 %vm213_vm0, %v186_v38  ;;  %v351_v44 = vmax.f32 %v272_v41, 0.0  ;;  %v1293_v41 = vld [vmem:[%s1796_s1 + $0xa0] sm:$0xff] }
  0x9e   : > { %669 = vmatpush.bf16.msra.mxu2 %v1293_v41 }
  0xa0   : > { %v273_v42 = vpop.f32.mrf.mxu0 }
  0xa1   : > { %v274_v43 = vadd.f32 %v273_v42, %v1636_v40 }
  0xa3   : > { %v352_v45 = vmax.f32 %v274_v43, 0.0 }
  0xa5   : > { %v383_v48 = vpack.c.bf16 %v352_v45, %v351_v44  ;;  %v1292_v44 = vld [vmem:[%s1796_s1 + $0x98] sm:$0xff] }
  0xa6   : > { %670 = vmatpush.bf16.msra.mxu2 %v1292_v44 }
  0xa7   : > { %472 = vmatmul.bf16.vlgmr.msra.gmra.mxu1 %v383_v48  ;;  %v176_v48 = vld [vmem:[%s1581_s29 + $0xf0] sm:$0xff] }
  0xa8   : > { %v276_v50 = vpop.f32.mrf.mxu0 }
  0xa9   : > { %v277_v51 = vadd.f32 %v276_v50, %v1636_v40  ;;  %v1291_v50 = vld [vmem:[%s1796_s1 + $0x90] sm:$0xff] }
  0xaa   : > { %671 = vmatpush.bf16.msra.mxu2 %v1291_v50 }
  0xab   : > { %1123 = vmatmul.msk.bf16.gmra.mxu0 %vm213_vm0, %v187_v49  ;;  %v353_v54 = vmax.f32 %v277_v51, 0.0  ;;  %v177_v49 = vld [vmem:[%s1581_s29 + $0xf8] sm:$0xff]  ;;  %s1305_s29 = sshll.u32 %s1544_s13, 7 }
  0xac   : > { %s1033_s30 = scalar_lea.hbm %s1797_s2, %s1305_s29 }
  0xad   : > { %s1036_s4 = sshll.u32 %s1033_s30, 4  ;;  %s1037_s4 = int_to_ptr.hbm [resolvable:$true] %s1036_s4 }
  0xae   : > { %s1456_s6 = sshra.s32 %s1037_s4, 4  ;;  %s1457_s6 = int_to_ptr.hbm [resolvable:$true] %s1456_s6 }
  0xaf   : > { %s1458_s7 = scalar_lea.hbm %s1457_s6, 128  ;;  %p1463_p0 = scmp.lt.s32.totalorder %s1457_s6, %s1797_s2 }
  0xb0   : > { %v278_v52 = vpop.f32.mrf.mxu0  ;;  %p1459_p11 = scmp.ne.s32.totalorder %s1457_s6, %s1458_s7  ;;  %p1464_p1 = scmp.lt.s32.totalorder %s1462_s14, %s1458_s7 }
  0xb1   : > { %v279_v53 = vadd.f32 %v278_v52, %v1636_v40  ;;  %v193_v52 = vpack.c.bf16 %v177_v49, %v176_v48 }
  0xb2   : > { %p1460_p12 = pnand %p1459_p11, %p1561_p5  ;;  %p1465_p2 = por %p1464_p1, %p1463_p0 }
  0xb3   : > { %v354_v55 = vmax.f32 %v279_v53, 0.0 }
  0xb4   : > { %p1461_p13 = pneg %p1460_p12 }
  0xb5   : > { %v384_v58 = vpack.c.bf16 %v354_v55, %v353_v54  ;;  %v1290_v54 = vld [vmem:[%s1796_s1 + $0x88] sm:$0xff]  ;;  %v1289_v55 = vld [vmem:[%s1796_s1 + $0x80] sm:$0xff] }
  0xb6   : > { %672 = vmatpush.bf16.msra.mxu2 %v1290_v54  ;;  %p1466_p3 = pnand %p1465_p2, %p1461_p13 }
  0xb7   : > { %477 = vmatmul.bf16.gmra.mxu1 %v384_v58 }
  0xb8   : > { %v281_v60 = vpop.f32.mrf.mxu0 }
  0xb9   : > { %v282_v61 = vadd.f32 %v281_v60, %v1636_v40 }
  0xba   : > { %673 = vmatpush.bf16.msra.mxu2 %v1289_v55 }
  0xbb   : > { %1124 = vmatmul.msk.bf16.gmra.mxu0 %vm213_vm0, %v188_v59  ;;  %v355_v0 = vmax.f32 %v282_v61, 0.0 }
  0xc0   : > { %v283_v62 = vpop.f32.mrf.mxu0 }
  0xc1   : > { %v284_v63 = vadd.f32 %v283_v62, %v1636_v40 }
  0xc3   : > { %v356_v1 = vmax.f32 %v284_v63, 0.0 }
  0xc5   : > { %v385_v4 = vpack.c.bf16 %v356_v1, %v355_v0 }
  0xc7   : > { %482 = vmatmul.bf16.gmra.mxu1 %v385_v4 }
  0xc8   : > { %v286_v6 = vpop.f32.mrf.mxu0 }
  0xc9   : > { %v287_v7 = vadd.f32 %v286_v6, %v1636_v40 }
  0xcb   : > { %1125 = vmatmul.msk.bf16.gmra.mxu0 %vm213_vm0, %v189_v5  ;;  %v357_v10 = vmax.f32 %v287_v7, 0.0 }
  0xd0   : > { %v288_v8 = vpop.f32.mrf.mxu0 }
  0xd1   : > { %v289_v9 = vadd.f32 %v288_v8, %v1636_v40 }
  0xd3   : > { %v358_v11 = vmax.f32 %v289_v9, 0.0 }
  0xd5   : > { %v386_v14 = vpack.c.bf16 %v358_v11, %v357_v10 }
  0xd7   : > { %487 = vmatmul.bf16.gmra.mxu1 %v386_v14 }
  0xd8   : > { %v291_v16 = vpop.f32.mrf.mxu0 }
  0xd9   : > { %v292_v17 = vadd.f32 %v291_v16, %v1636_v40 }
  0xdb   : > { %1126 = vmatmul.msk.bf16.gmra.mxu0 %vm213_vm0, %v190_v15  ;;  %v359_v20 = vmax.f32 %v292_v17, 0.0 }
  0xe0   : > { %v293_v18 = vpop.f32.mrf.mxu0 }
  0xe1   : > { %v294_v19 = vadd.f32 %v293_v18, %v1636_v40 }
  0xe3   : > { %v360_v21 = vmax.f32 %v294_v19, 0.0 }
  0xe5   : > { %v387_v24 = vpack.c.bf16 %v360_v21, %v359_v20 }
  0xe7   : > { %492 = vmatmul.bf16.gmra.mxu1 %v387_v24 }
  0xe8   : > { %v296_v26 = vpop.f32.mrf.mxu0 }
  0xe9   : > { %v297_v27 = vadd.f32 %v296_v26, %v1636_v40 }
  0xeb   : > { %1127 = vmatmul.msk.bf16.gmra.mxu0 %vm213_vm0, %v191_v25  ;;  %v361_v31 = vmax.f32 %v297_v27, 0.0 }
  0xf0   : > { %v298_v28 = vpop.f32.mrf.mxu0 }
  0xf1   : > { %v299_v30 = vadd.f32 %v298_v28, %v1636_v40 }
  0xf3   : > { %v362_v32 = vmax.f32 %v299_v30, 0.0 }
  0xf5   : > { %v388_v36 = vpack.c.bf16 %v362_v32, %v361_v31 }
  0xf7   : > { %497 = vmatmul.bf16.gmra.mxu1 %v388_v36 }
  0xf8   : > { %v301_v38 = vpop.f32.mrf.mxu0 }
  0xf9   : > { %v302_v42 = vadd.f32 %v301_v38, %v1636_v40 }
  0xfb   : > { %1128 = vmatmul.msk.bf16.gmra.mxu0 %vm213_vm0, %v192_v37  ;;  %v363_v46 = vmax.f32 %v302_v42, 0.0 }
 0x100   : > { %v303_v43 = vpop.f32.mrf.mxu0 }
 0x101   : > { %v304_v45 = vadd.f32 %v303_v43, %v1636_v40 }
 0x103   : > { %v364_v47 = vmax.f32 %v304_v45, 0.0 }
 0x105   : > { %v389_v51 = vpack.c.bf16 %v364_v47, %v363_v46 }
 0x107   : > { %502 = vmatmul.bf16.gmra.mxu1 %v389_v51 }
 0x108   : > { %v306_v53 = vpop.f32.mrf.mxu0 }
 0x109   : > { %v307_v56 = vadd.f32 %v306_v53, %v1636_v40 }
 0x10b   : > { %1129 = vmatmul.msk.bf16.gmra.mxu0 %vm213_vm0, %v193_v52  ;;  %v365_v59 = vmax.f32 %v307_v56, 0.0 }
 0x110   : > { %v308_v57 = vpop.f32.mrf.mxu0 }
 0x111   : > { %v309_v58 = vadd.f32 %v308_v57, %v1636_v40 }
 0x113   : > { %v366_v60 = vmax.f32 %v309_v58, 0.0 }
 0x115   : > { %v390_v61 = vpack.c.bf16 %v366_v60, %v365_v59 }
 0x117   : > { %507 = vmatmul.bf16.gmra.mxu1 %v390_v61 }
 0x118   : > { %v311_v62 = vpop.f32.mrf.mxu0 }
 0x119   : > { %v312_v63 = vadd.f32 %v311_v62, %v1636_v40 }
 0x11b   : > { %v367_v2 = vmax.f32 %v312_v63, 0.0 }
 0x120   : > { %v313_v0 = vpop.f32.mrf.mxu0 }
 0x121   : > { %v314_v1 = vadd.f32 %v313_v0, %v1636_v40 }
 0x123   : > { %v368_v3 = vmax.f32 %v314_v1, 0.0 }
 0x124   : > { %v473_v4 = vpop.f32.mrf.mxu1 }
 0x125   : > { %v391_v5 = vpack.c.bf16 %v368_v3, %v367_v2  ;;  %v553_v8 = vmax.f32 %v473_v4, 0.0 }
 0x127   : > { %512 = vmatmul.bf16.gmra.mxu1 %v391_v5 }
 0x128   : > { %v316_v6 = vpop.f32.mrf.mxu0 }
 0x129   : > { %v317_v10 = vadd.f32 %v316_v6, %v1636_v40 }
 0x12b   : > { %v369_v14 = vmax.f32 %v317_v10, 0.0  ;;  %v1304_v10 = vld [vmem:[%s1796_s1 + $0xf8] sm:$0xff] }
 0x12c   : > { %v475_v7 = vpop.f32.mrf.mxu1  ;;  %868 = vmatpush.bf16.msra.mxu3 %v1304_v10 }
 0x12d   : > { %v554_v9 = vmax.f32 %v475_v7, 0.0 }
 0x12f   : > { %v585_v11 = vpack.c.bf16 %v554_v9, %v553_v8 }
 0x130   : > { %v318_v12 = vpop.f32.mrf.mxu0 }
 0x131   : > { %v319_v13 = vadd.f32 %v318_v12, %v1636_v40  ;;  %674 = vmatmul.bf16.vlgmr.msra.gmra.mxu2 %v585_v11 }
 0x133   : > { %v370_v15 = vmax.f32 %v319_v13, 0.0 }
 0x134   : > { %v478_v16 = vpop.f32.mrf.mxu1 }
 0x135   : > { %v392_v17 = vpack.c.bf16 %v370_v15, %v369_v14  ;;  %v555_v20 = vmax.f32 %v478_v16, 0.0  ;;  %v1303_v15 = vld [vmem:[%s1796_s1 + $0xf0] sm:$0xff] }
 0x136   : > { %869 = vmatpush.bf16.msra.mxu3 %v1303_v15 }
 0x137   : > { %517 = vmatmul.bf16.gmra.mxu1 %v392_v17  ;;  %v1302_v17 = vld [vmem:[%s1796_s1 + $0xe8] sm:$0xff] }
 0x138   : > { %v321_v18 = vpop.f32.mrf.mxu0 }
 0x139   : > { %v322_v22 = vadd.f32 %v321_v18, %v1636_v40 }
 0x13a   : > { %870 = vmatpush.bf16.msra.mxu3 %v1302_v17 }
 0x13b   : > { %v371_v26 = vmax.f32 %v322_v22, 0.0 }
 0x13c   : > { %v480_v19 = vpop.f32.mrf.mxu1 }
 0x13d   : > { %v556_v21 = vmax.f32 %v480_v19, 0.0 }
 0x13f   : > { %v586_v23 = vpack.c.bf16 %v556_v21, %v555_v20  ;;  %v1301_v20 = vld [vmem:[%s1796_s1 + $0xe0] sm:$0xff] }
 0x140   : > { %v323_v24 = vpop.f32.mrf.mxu0  ;;  %871 = vmatpush.bf16.msra.mxu3 %v1301_v20 }
 0x141   : > { %v324_v25 = vadd.f32 %v323_v24, %v1636_v40  ;;  %679 = vmatmul.bf16.gmra.mxu2 %v586_v23 }
 0x143   : > { %v372_v27 = vmax.f32 %v324_v25, 0.0 }
 0x144   : > { %v483_v28 = vpop.f32.mrf.mxu1 }
 0x145   : > { %v393_v29 = vpack.c.bf16 %v372_v27, %v371_v26  ;;  %v557_v32 = vmax.f32 %v483_v28, 0.0  ;;  %v1300_v26 = vld [vmem:[%s1796_s1 + $0xd8] sm:$0xff] }
 0x146   : > { %872 = vmatpush.bf16.msra.mxu3 %v1300_v26 }
 0x147   : > { %522 = vmatmul.bf16.gmra.mxu1 %v393_v29 }
 0x148   : > { %v326_v30 = vpop.f32.mrf.mxu0 }
 0x149   : > { %v327_v34 = vadd.f32 %v326_v30, %v1636_v40 }
 0x14b   : > { %v373_v38 = vmax.f32 %v327_v34, 0.0 }
 0x14c   : > { %v485_v31 = vpop.f32.mrf.mxu1 }
 0x14d   : > { %v558_v33 = vmax.f32 %v485_v31, 0.0  ;;  %v1299_v31 = vld [vmem:[%s1796_s1 + $0xd0] sm:$0xff] }
 0x14e   : > { %873 = vmatpush.bf16.msra.mxu3 %v1299_v31 }
 0x14f   : > { %v587_v35 = vpack.c.bf16 %v558_v33, %v557_v32  ;;  %v1298_v33 = vld [vmem:[%s1796_s1 + $0xc8] sm:$0xff] }
 0x150   : > { %v328_v36 = vpop.f32.mrf.mxu0 }
 0x151   : > { %v329_v37 = vadd.f32 %v328_v36, %v1636_v40  ;;  %684 = vmatmul.bf16.gmra.mxu2 %v587_v35 }
 0x152   : > { %874 = vmatpush.bf16.msra.mxu3 %v1298_v33 }
 0x153   : > { %v374_v39 = vmax.f32 %v329_v37, 0.0 }
 0x154   : > { %v488_v41 = vpop.f32.mrf.mxu1 }
 0x155   : > { %v394_v42 = vpack.c.bf16 %v374_v39, %v373_v38  ;;  %v559_v45 = vmax.f32 %v488_v41, 0.0 }
 0x157   : > { %527 = vmatmul.bf16.gmra.mxu1 %v394_v42 }
 0x158   : > { %v331_v43 = vpop.f32.mrf.mxu0 }
 0x159   : > { %v332_v47 = vadd.f32 %v331_v43, %v1636_v40 }
 0x15b   : > { %v375_v51 = vmax.f32 %v332_v47, 0.0 }
 0x15c   : > { %v490_v44 = vpop.f32.mrf.mxu1 }
 0x15d   : > { %v560_v46 = vmax.f32 %v490_v44, 0.0 }
 0x15f   : > { %v588_v48 = vpack.c.bf16 %v560_v46, %v559_v45 }
 0x160   : > { %v333_v49 = vpop.f32.mrf.mxu0 }
 0x161   : > { %v334_v50 = vadd.f32 %v333_v49, %v1636_v40  ;;  %689 = vmatmul.bf16.gmra.mxu2 %v588_v48 }
 0x163   : > { %v376_v52 = vmax.f32 %v334_v50, 0.0 }
 0x164   : > { %v493_v53 = vpop.f32.mrf.mxu1 }
 0x165   : > { %v395_v54 = vpack.c.bf16 %v376_v52, %v375_v51  ;;  %v561_v57 = vmax.f32 %v493_v53, 0.0 }
 0x167   : > { %532 = vmatmul.bf16.gmra.mxu1 %v395_v54 }
 0x168   : > { %v336_v55 = vpop.f32.mrf.mxu0 }
 0x169   : > { %v337_v59 = vadd.f32 %v336_v55, %v1636_v40 }
 0x16b   : > { %v377_v63 = vmax.f32 %v337_v59, 0.0 }
 0x16c   : > { %v495_v56 = vpop.f32.mrf.mxu1 }
 0x16d   : > { %v562_v58 = vmax.f32 %v495_v56, 0.0 }
 0x16f   : > { %v589_v60 = vpack.c.bf16 %v562_v58, %v561_v57 }
 0x170   : > { %v338_v61 = vpop.f32.mrf.mxu0 }
 0x171   : > { %v339_v62 = vadd.f32 %v338_v61, %v1636_v40  ;;  %694 = vmatmul.bf16.gmra.mxu2 %v589_v60 }
 0x173   : > { %v378_v0 = vmax.f32 %v339_v62, 0.0 }
 0x174   : > { %v498_v1 = vpop.f32.mrf.mxu1 }
 0x175   : > { %v396_v2 = vpack.c.bf16 %v378_v0, %v377_v63  ;;  %v563_v5 = vmax.f32 %v498_v1, 0.0 }
 0x177   : > { %537 = vmatmul.bf16.gmra.mxu1 %v396_v2 }
 0x178   : > { %v341_v3 = vpop.f32.mrf.mxu0 }
 0x179   : > { %v342_v7 = vadd.f32 %v341_v3, %v1636_v40 }
 0x17b   : > { %v379_v12 = vmax.f32 %v342_v7, 0.0 }
 0x17c   : > { %v500_v4 = vpop.f32.mrf.mxu1 }
 0x17d   : > { %v564_v6 = vmax.f32 %v500_v4, 0.0 }
 0x17f   : > { %v590_v8 = vpack.c.bf16 %v564_v6, %v563_v5 }
 0x180   : > { %v343_v9 = vpop.f32.mrf.mxu0 }
 0x181   : > { %v344_v11 = vadd.f32 %v343_v9, %v1636_v40  ;;  %699 = vmatmul.bf16.gmra.mxu2 %v590_v8 }
 0x183   : > { %v380_v13 = vmax.f32 %v344_v11, 0.0 }
 0x184   : > { %v503_v14 = vpop.f32.mrf.mxu1 }
 0x185   : > { %v397_v16 = vpack.c.bf16 %v380_v13, %v379_v12  ;;  %v565_v21 = vmax.f32 %v503_v14, 0.0 }
 0x187   : > { %542 = vmatmul.bf16.gmra.mxu1 %v397_v16 }
 0x188   : > { %v346_v18 = vpop.f32.mrf.mxu0 }
 0x189   : > { %v347_v23 = vadd.f32 %v346_v18, %v1636_v40 }
 0x18b   : > { %v381_v28 = vmax.f32 %v347_v23, 0.0 }
 0x18c   : > { %v505_v19 = vpop.f32.mrf.mxu1 }
 0x18d   : > { %v566_v22 = vmax.f32 %v505_v19, 0.0 }
 0x18f   : > { %v591_v24 = vpack.c.bf16 %v566_v22, %v565_v21 }
 0x190   : > { %v348_v25 = vpop.f32.mrf.mxu0 }
 0x191   : > { %v349_v27 = vadd.f32 %v348_v25, %v1636_v40  ;;  %704 = vmatmul.bf16.gmra.mxu2 %v591_v24  ;;  %v1297_v40 = vld [vmem:[%s1796_s1 + $0xc0] sm:$0xff] }
 0x192   : > { %875 = vmatpush.bf16.msra.mxu3 %v1297_v40 }
 0x193   : > { %v382_v29 = vmax.f32 %v349_v27, 0.0 }
 0x194   : > { %v508_v30 = vpop.f32.mrf.mxu1 }
 0x195   : > { %v398_v32 = vpack.c.bf16 %v382_v29, %v381_v28  ;;  %v567_v35 = vmax.f32 %v508_v30, 0.0 }
 0x197   : > { %547 = vmatmul.bf16.gmra.mxu1 %v398_v32 }
 0x19c   : > { %v510_v34 = vpop.f32.mrf.mxu1 }
 0x19d   : > { %v568_v36 = vmax.f32 %v510_v34, 0.0 }
 0x19f   : > { %v592_v37 = vpack.c.bf16 %v568_v36, %v567_v35 }
 0x1a1   : > { %709 = vmatmul.bf16.gmra.mxu2 %v592_v37 }
 0x1a4   : > { %v513_v38 = vpop.f32.mrf.mxu1 }
 0x1a5   : > { %v569_v41 = vmax.f32 %v513_v38, 0.0 }
 0x1ac   : > { %v515_v39 = vpop.f32.mrf.mxu1 }
 0x1ad   : > { %v570_v42 = vmax.f32 %v515_v39, 0.0 }
 0x1af   : > { %v593_v43 = vpack.c.bf16 %v570_v42, %v569_v41 }
 0x1b1   : > { %714 = vmatmul.bf16.gmra.mxu2 %v593_v43 }
 0x1b4   : > { %v518_v44 = vpop.f32.mrf.mxu1  ;;  %v675_v45 = vpop.f32.mrf.mxu2 }
 0x1b5   : > { %v571_v48 = vmax.f32 %v518_v44, 0.0  ;;  %v755_v49 = vmax.f32 %v675_v45, 0.0 }
 0x1bc   : > { %v520_v46 = vpop.f32.mrf.mxu1  ;;  %v677_v47 = vpop.f32.mrf.mxu2 }
 0x1bd   : > { %v572_v50 = vmax.f32 %v520_v46, 0.0  ;;  %v756_v51 = vmax.f32 %v677_v47, 0.0 }
 0x1bf   : > { %v594_v52 = vpack.c.bf16 %v572_v50, %v571_v48  ;;  %v787_v53 = vpack.c.bf16 %v756_v51, %v755_v49 }
 0x1c1   : > { %719 = vmatmul.bf16.gmra.mxu2 %v594_v52  ;;  %876 = vmatmul.bf16.vlgmr.msra.gmra.mxu3 %v787_v53 }
 0x1c4   : > { %v523_v54 = vpop.f32.mrf.mxu1  ;;  %v680_v55 = vpop.f32.mrf.mxu2 }
 0x1c5   : > { %v573_v58 = vmax.f32 %v523_v54, 0.0  ;;  %v757_v59 = vmax.f32 %v680_v55, 0.0 }
 0x1cc   : > { %v525_v56 = vpop.f32.mrf.mxu1  ;;  %v682_v57 = vpop.f32.mrf.mxu2 }
 0x1cd   : > { %v574_v60 = vmax.f32 %v525_v56, 0.0  ;;  %v758_v61 = vmax.f32 %v682_v57, 0.0 }
 0x1cf   : > { %v595_v62 = vpack.c.bf16 %v574_v60, %v573_v58  ;;  %v788_v63 = vpack.c.bf16 %v758_v61, %v757_v59 }
 0x1d1   : > { %724 = vmatmul.bf16.gmra.mxu2 %v595_v62  ;;  %881 = vmatmul.bf16.gmra.mxu3 %v788_v63 }
 0x1d4   : > { %v528_v0 = vpop.f32.mrf.mxu1  ;;  %v685_v1 = vpop.f32.mrf.mxu2 }
 0x1d5   : > { %v575_v4 = vmax.f32 %v528_v0, 0.0  ;;  %v759_v5 = vmax.f32 %v685_v1, 0.0 }
 0x1dc   : > { %v530_v2 = vpop.f32.mrf.mxu1  ;;  %v687_v3 = vpop.f32.mrf.mxu2 }
 0x1dd   : > { %v576_v6 = vmax.f32 %v530_v2, 0.0  ;;  %v760_v7 = vmax.f32 %v687_v3, 0.0 }
 0x1df   : > { %v596_v8 = vpack.c.bf16 %v576_v6, %v575_v4  ;;  %v789_v9 = vpack.c.bf16 %v760_v7, %v759_v5 }
 0x1e1   : > { %729 = vmatmul.bf16.gmra.mxu2 %v596_v8  ;;  %886 = vmatmul.bf16.gmra.mxu3 %v789_v9 }
 0x1e4   : > { %v533_v10 = vpop.f32.mrf.mxu1  ;;  %v690_v11 = vpop.f32.mrf.mxu2 }
 0x1e5   : > { %v577_v14 = vmax.f32 %v533_v10, 0.0  ;;  %v761_v15 = vmax.f32 %v690_v11, 0.0 }
 0x1ec   : > { %v535_v12 = vpop.f32.mrf.mxu1  ;;  %v692_v13 = vpop.f32.mrf.mxu2 }
 0x1ed   : > { %v578_v16 = vmax.f32 %v535_v12, 0.0  ;;  %v762_v17 = vmax.f32 %v692_v13, 0.0 }
 0x1ef   : > { %v597_v18 = vpack.c.bf16 %v578_v16, %v577_v14  ;;  %v790_v19 = vpack.c.bf16 %v762_v17, %v761_v15 }
 0x1f1   : > { %734 = vmatmul.bf16.gmra.mxu2 %v597_v18  ;;  %891 = vmatmul.bf16.gmra.mxu3 %v790_v19 }
 0x1f4   : > { %v538_v20 = vpop.f32.mrf.mxu1  ;;  %v695_v21 = vpop.f32.mrf.mxu2 }
 0x1f5   : > { %v579_v24 = vmax.f32 %v538_v20, 0.0  ;;  %v763_v25 = vmax.f32 %v695_v21, 0.0 }
 0x1fc   : > { %v540_v22 = vpop.f32.mrf.mxu1  ;;  %v697_v23 = vpop.f32.mrf.mxu2 }
 0x1fd   : > { %v580_v26 = vmax.f32 %v540_v22, 0.0  ;;  %v764_v27 = vmax.f32 %v697_v23, 0.0 }
 0x1ff   : > { %v598_v28 = vpack.c.bf16 %v580_v26, %v579_v24  ;;  %v791_v29 = vpack.c.bf16 %v764_v27, %v763_v25 }
 0x201   : > { %739 = vmatmul.bf16.gmra.mxu2 %v598_v28  ;;  %896 = vmatmul.bf16.gmra.mxu3 %v791_v29 }
 0x204   : > { %v543_v30 = vpop.f32.mrf.mxu1  ;;  %v700_v31 = vpop.f32.mrf.mxu2 }
 0x205   : > { %v581_v34 = vmax.f32 %v543_v30, 0.0  ;;  %v765_v40 = vmax.f32 %v700_v31, 0.0 }
 0x20c   : > { %v545_v32 = vpop.f32.mrf.mxu1  ;;  %v702_v33 = vpop.f32.mrf.mxu2 }
 0x20d   : > { %v582_v35 = vmax.f32 %v545_v32, 0.0  ;;  %v766_v36 = vmax.f32 %v702_v33, 0.0 }
 0x20f   : > { %v599_v37 = vpack.c.bf16 %v582_v35, %v581_v34  ;;  %v792_v38 = vpack.c.bf16 %v766_v36, %v765_v40 }
 0x211   : > { %744 = vmatmul.bf16.gmra.mxu2 %v599_v37  ;;  %901 = vmatmul.bf16.gmra.mxu3 %v792_v38 }
 0x214   : > { %v548_v39 = vpop.f32.mrf.mxu1  ;;  %v705_v41 = vpop.f32.mrf.mxu2 }
 0x215   : > { %v583_v44 = vmax.f32 %v548_v39, 0.0  ;;  %v767_v45 = vmax.f32 %v705_v41, 0.0 }
 0x21c   : > { %v550_v42 = vpop.f32.mrf.mxu1  ;;  %v707_v43 = vpop.f32.mrf.mxu2 }
 0x21d   : > { %v584_v46 = vmax.f32 %v550_v42, 0.0  ;;  %v768_v47 = vmax.f32 %v707_v43, 0.0 }
 0x21f   : > { %v600_v48 = vpack.c.bf16 %v584_v46, %v583_v44  ;;  %v793_v49 = vpack.c.bf16 %v768_v47, %v767_v45 }
 0x221   : > { %749 = vmatmul.bf16.gmra.mxu2 %v600_v48  ;;  %906 = vmatmul.bf16.gmra.mxu3 %v793_v49 }
 0x224   : > { %v710_v50 = vpop.f32.mrf.mxu2 }
 0x225   : > { %v769_v52 = vmax.f32 %v710_v50, 0.0 }
 0x22c   : > { %v712_v51 = vpop.f32.mrf.mxu2 }
 0x22d   : > { %v770_v53 = vmax.f32 %v712_v51, 0.0 }
 0x22f   : > { %v794_v54 = vpack.c.bf16 %v770_v53, %v769_v52 }
 0x231   : > { %911 = vmatmul.bf16.gmra.mxu3 %v794_v54 }
 0x234   : > { %v715_v55 = vpop.f32.mrf.mxu2 }
 0x235   : > { %v771_v57 = vmax.f32 %v715_v55, 0.0 }
 0x23c   : > { %v717_v56 = vpop.f32.mrf.mxu2 }
 0x23d   : > { %v772_v58 = vmax.f32 %v717_v56, 0.0 }
 0x23f   : > { %v795_v59 = vpack.c.bf16 %v772_v58, %v771_v57 }
 0x241   : > { %916 = vmatmul.bf16.gmra.mxu3 %v795_v59 }
 0x244   : > { %v720_v60 = vpop.f32.mrf.mxu2  ;;  %v877_v61 = vpop.f32.mrf.mxu3 }
 0x245   : > { %v773_v0 = vmax.f32 %v720_v60, 0.0 }
 0x24c   : > { %v722_v62 = vpop.f32.mrf.mxu2  ;;  %v879_v63 = vpop.f32.mrf.mxu3 }
 0x24d   : > { %v774_v1 = vmax.f32 %v722_v62, 0.0  ;;  %v1309_v2 = vpack.c.bf16 %v879_v63, %v877_v61 }
 0x24f   : > { %1310 = vst [vmem:[%s1743_s26] sm:$0xff] %v1309_v2   ;;  %v796_v3 = vpack.c.bf16 %v774_v1, %v773_v0 }
 0x251   : > { %921 = vmatmul.bf16.gmra.mxu3 %v796_v3 }
 0x254   : > { %v725_v4 = vpop.f32.mrf.mxu2  ;;  %v882_v5 = vpop.f32.mrf.mxu3 }
 0x255   : > { %v775_v8 = vmax.f32 %v725_v4, 0.0 }
 0x25c   : > { %v727_v6 = vpop.f32.mrf.mxu2  ;;  %v884_v7 = vpop.f32.mrf.mxu3 }
 0x25d   : > { %v776_v9 = vmax.f32 %v727_v6, 0.0  ;;  %v1314_v10 = vpack.c.bf16 %v884_v7, %v882_v5 }
 0x25f   : > { %1386 = vst [vmem:[%s1743_s26 + $0x8] sm:$0xff] %v1314_v10   ;;  %v797_v11 = vpack.c.bf16 %v776_v9, %v775_v8 }
 0x261   : > { %926 = vmatmul.bf16.gmra.mxu3 %v797_v11 }
 0x264   : > { %v730_v12 = vpop.f32.mrf.mxu2  ;;  %v887_v13 = vpop.f32.mrf.mxu3 }
 0x265   : > { %v777_v16 = vmax.f32 %v730_v12, 0.0 }
 0x26c   : > { %v732_v14 = vpop.f32.mrf.mxu2  ;;  %v889_v15 = vpop.f32.mrf.mxu3 }
 0x26d   : > { %v778_v17 = vmax.f32 %v732_v14, 0.0  ;;  %v1319_v18 = vpack.c.bf16 %v889_v15, %v887_v13 }
 0x26f   : > { %1387 = vst [vmem:[%s1743_s26 + $0x10] sm:$0xff] %v1319_v18   ;;  %v798_v19 = vpack.c.bf16 %v778_v17, %v777_v16 }
 0x271   : > { %931 = vmatmul.bf16.gmra.mxu3 %v798_v19 }
 0x274   : > { %v735_v20 = vpop.f32.mrf.mxu2  ;;  %v892_v21 = vpop.f32.mrf.mxu3 }
 0x275   : > { %v779_v24 = vmax.f32 %v735_v20, 0.0 }
 0x27c   : > { %v737_v22 = vpop.f32.mrf.mxu2  ;;  %v894_v23 = vpop.f32.mrf.mxu3 }
 0x27d   : > { %v780_v25 = vmax.f32 %v737_v22, 0.0  ;;  %v1324_v26 = vpack.c.bf16 %v894_v23, %v892_v21 }
 0x27f   : > { %v799_v27 = vpack.c.bf16 %v780_v25, %v779_v24  ;;  %1388 = vst [vmem:[%s1743_s26 + $0x18] sm:$0xff] %v1324_v26  }
 0x281   : > { %936 = vmatmul.bf16.gmra.mxu3 %v799_v27 }
 0x284   : > { %v740_v28 = vpop.f32.mrf.mxu2  ;;  %v897_v29 = vpop.f32.mrf.mxu3 }
 0x285   : > { %v781_v32 = vmax.f32 %v740_v28, 0.0 }
 0x28c   : > { %v742_v30 = vpop.f32.mrf.mxu2  ;;  %v899_v31 = vpop.f32.mrf.mxu3 }
 0x28d   : > { %v782_v33 = vmax.f32 %v742_v30, 0.0  ;;  %v1329_v34 = vpack.c.bf16 %v899_v31, %v897_v29 }
 0x28f   : > { %v800_v40 = vpack.c.bf16 %v782_v33, %v781_v32  ;;  %1389 = vst [vmem:[%s1743_s26 + $0x20] sm:$0xff] %v1329_v34  }
 0x291   : > { %941 = vmatmul.bf16.gmra.mxu3 %v800_v40 }
 0x294   : > { %v745_v35 = vpop.f32.mrf.mxu2  ;;  %v902_v36 = vpop.f32.mrf.mxu3 }
 0x295   : > { %v783_v39 = vmax.f32 %v745_v35, 0.0 }
 0x29c   : > { %v747_v37 = vpop.f32.mrf.mxu2  ;;  %v904_v38 = vpop.f32.mrf.mxu3 }
 0x29d   : > { %v784_v41 = vmax.f32 %v747_v37, 0.0  ;;  %v1334_v42 = vpack.c.bf16 %v904_v38, %v902_v36 }
 0x29f   : > { %v801_v43 = vpack.c.bf16 %v784_v41, %v783_v39  ;;  %1390 = vst [vmem:[%s1743_s26 + $0x28] sm:$0xff] %v1334_v42  }
 0x2a1   : > { %946 = vmatmul.bf16.gmra.mxu3 %v801_v43 }
 0x2a4   : > { %v750_v44 = vpop.f32.mrf.mxu2  ;;  %v907_v45 = vpop.f32.mrf.mxu3 }
 0x2a5   : > { %v785_v48 = vmax.f32 %v750_v44, 0.0 }
 0x2ac   : > { %v752_v46 = vpop.f32.mrf.mxu2  ;;  %v909_v47 = vpop.f32.mrf.mxu3 }
 0x2ad   : > { %v786_v49 = vmax.f32 %v752_v46, 0.0  ;;  %v1339_v50 = vpack.c.bf16 %v909_v47, %v907_v45 }
 0x2af   : > { %v802_v51 = vpack.c.bf16 %v786_v49, %v785_v48  ;;  %1391 = vst [vmem:[%s1743_s26 + $0x30] sm:$0xff] %v1339_v50  }
 0x2b1   : > { %951 = vmatmul.bf16.gmra.mxu3 %v802_v51 }
 0x2b4   : > { %v912_v52 = vpop.f32.mrf.mxu3 }
 0x2bc   : > { %v914_v53 = vpop.f32.mrf.mxu3 }
 0x2bd   : > { %v1344_v54 = vpack.c.bf16 %v914_v53, %v912_v52 }
 0x2bf   : > { %1392 = vst [vmem:[%s1743_s26 + $0x38] sm:$0xff] %v1344_v54  }
 0x2c4   : > { %v917_v55 = vpop.f32.mrf.mxu3 }
 0x2cc   : > { %v919_v56 = vpop.f32.mrf.mxu3 }
 0x2cd   : > { %v1349_v57 = vpack.c.bf16 %v919_v56, %v917_v55 }
 0x2cf   : > { %1393 = vst [vmem:[%s1743_s26 + $0x40] sm:$0xff] %v1349_v57  }
 0x2d4   : > { %v922_v58 = vpop.f32.mrf.mxu3 }
 0x2dc   : > { %v924_v59 = vpop.f32.mrf.mxu3 }
 0x2dd   : > { %v1354_v60 = vpack.c.bf16 %v924_v59, %v922_v58 }
 0x2df   : > { %1394 = vst [vmem:[%s1743_s26 + $0x48] sm:$0xff] %v1354_v60  }
 0x2e4   : > { %v927_v61 = vpop.f32.mrf.mxu3 }
 0x2ec   : > { %v929_v62 = vpop.f32.mrf.mxu3 }
 0x2ed   : > { %v1359_v63 = vpack.c.bf16 %v929_v62, %v927_v61 }
 0x2ef   : > { %1395 = vst [vmem:[%s1743_s26 + $0x50] sm:$0xff] %v1359_v63  }
 0x2f4   : > { %v932_v0 = vpop.f32.mrf.mxu3 }
 0x2fc   : > { %v934_v1 = vpop.f32.mrf.mxu3 }
 0x2fd   : > { %v1364_v2 = vpack.c.bf16 %v934_v1, %v932_v0 }
 0x2ff   : > { %1396 = vst [vmem:[%s1743_s26 + $0x58] sm:$0xff] %v1364_v2  }
 0x304   : > { %v937_v3 = vpop.f32.mrf.mxu3 }
 0x30c   : > { %v939_v4 = vpop.f32.mrf.mxu3 }
 0x30d   : > { %v1369_v5 = vpack.c.bf16 %v939_v4, %v937_v3 }
 0x30f   : > { %1397 = vst [vmem:[%s1743_s26 + $0x60] sm:$0xff] %v1369_v5  }
 0x314   : > { %v942_v6 = vpop.f32.mrf.mxu3 }
 0x31c   : > { %v944_v7 = vpop.f32.mrf.mxu3 }
 0x31d   : > { %v1374_v8 = vpack.c.bf16 %v944_v7, %v942_v6 }
 0x31f   : > { %1398 = vst [vmem:[%s1743_s26 + $0x68] sm:$0xff] %v1374_v8  }
 0x324   : > { %v947_v9 = vpop.f32.mrf.mxu3 }
 0x32c   : > { %v949_v10 = vpop.f32.mrf.mxu3 }
 0x32d   : > { %v1379_v11 = vpack.c.bf16 %v949_v10, %v947_v9 }
 0x32f   : > { %1399 = vst [vmem:[%s1743_s26 + $0x70] sm:$0xff] %v1379_v11  }
 0x334   : > { %v952_v12 = vpop.f32.mrf.mxu3 }
 0x33c   : > { %v954_v13 = vpop.f32.mrf.mxu3 }
 0x33d   : > { %v1384_v14 = vpack.c.bf16 %v954_v13, %v952_v12 }
 0x33f   : > { %1400 = vst [vmem:[%s1743_s26 + $0x78] sm:$0xff] %v1384_v14  }
 0x340   : > { %1469 = shalt.err (!%p1466_p3)
}
 0x341   : > { %s1506_s21 = smov 64   ;;  %s1507_s22 = smov 4  }
 0x342   : > { %1401 = dma.vmem_to_hbm [thread:$0]  (%p1561_p5), %s1035_s3, 2048, %s1037_s4, %s1022_s5, %s1506_s21, %s1506_s21, %s1507_s22  }
 0x343 PF: > { %p1407_p4 = scmp.ge.s32.totalorder %s1504_s12, 2  ;;  %s1051_s23 = sand.u32 1, %s1492_s9  }
 0x344   : > { %s1052_s24 = scalar_lea.sflag [#allocation3], %s1051_s23 }
 0x345   : > { %p1404_p7 = pnand %p1407_p4, %p1565_p6 }
 0x347   : > { %p1405_p8 = pneg %p1404_p7 }
 0x349   : > { %1487 = dma.done.wait (%p1405_p8), %s1052_s24, 2048  }
 0x34a   : > { %1489 = vsyncadd (%p1405_p8), %s1052_s24, 4294965248  ;;  %p12_p9 = scmp.ge.s32.totalorder %s1548_s15, 4   ;;  %s1800_s9 = smov %s1496_s10 }
 0x34b   : > { %s1801_s10 = smov %s1500_s11  ;;  %s1802_s11 = smov %s1559_s18 }
 0x34c   : > { %s1803_s12 = smov %s1548_s15  ;;  %14 = sbr.rel (!%p12_p9) target bundleno = 3 (0x3), region = 66 }
 0x351   :  { %1058 = vsyncpa [#allocation3], 1 }
 0x352   :  { %1060 = vsyncpa [#allocation3 + $0x1], 1 }

</bundles_post_ra>
